<compile_context>
chip_gen: v6e
topology: v6e:2x2x1
jax: 0.10.0
libtpu: 0.0.40
codegen_flags: <defaults>
</compile_context>

<pallas_src>
import functools

import jax
import jax.numpy as jnp
from jax.experimental import pallas as pl
from jax.experimental.pallas import tpu as pltpu


def _returns_loss_kernel(a_ref, w_ref, dr_ref, pv_ref, out_ref, *,
                         inv_m, interest_rate, trading_cost, alpha):
    """Per-block body (batch on lanes, M on sublanes).

    a_ref  : (M,   TB) action    (cash weight in sublane 0)
    w_ref  : (M,   TB) previous weights
    dr_ref : (M-1, TB) daily returns (stock update factors)
    pv_ref : (2,   TB) [p_val_prev, p_val_prev_eq]
    out_ref: (1,   TB) per-timestep loss
    """
    a = a_ref[...]
    w = w_ref[...]
    dr = dr_ref[...]
    pv = pv_ref[0:1, :]
    pe = pv_ref[1:2, :]

    u0 = 1.0 + interest_rate  # cash-slot update factor, compile-time constant

    # Cross-sublane reductions over the M (<=16 sublane) axis.
    turnover = jnp.sum(jnp.abs(a - w), axis=0, keepdims=True)           # sum|a - w|
    gross = a[0:1, :] * u0 + jnp.sum(a[1:, :] * dr, axis=0, keepdims=True)

    # Fee only hits the cash slot (update factor u0), so the masked subtract of
    # the reference collapses to a scalar correction:
    #   p_val_new = sum((pv*a - fee*e0) * u) = pv * sum(a*u) - fee * u0
    fee = pv * turnover * trading_cost
    p_val_new = pv * gross - fee * u0
    returns = (p_val_new - pv) / pv

    # Equal-weight benchmark: sum(|u * pe/m|) = |pe| * (1/m) * sum(|u|).
    abs_u_sum = abs(u0) + jnp.sum(jnp.abs(dr), axis=0, keepdims=True)
    eq_val = jnp.abs(pe) * inv_m * abs_u_sum
    returns_eq = (eq_val - pe) / pe   # `.detach()` in PyTorch only affects grads

    max_a = jnp.max(a, axis=0, keepdims=True)   # no padded sublanes -> no mask

    # TODO(synk): `secondary(action, idx, returns)` hook not implemented (None by default).
    out_ref[...] = -(returns - returns_eq - alpha * max_a)


def returns_loss_batched(action, w_prev, p_val_prev, daily_ret, p_val_prev_eq,
                         interest_rate=0.02 / 250, trading_cost=0.0025, alpha=0.1,
                         block_cols=2048):
    """Batched loss over B timesteps.

    action, w_prev : (B, M)   with M = num_stocks + 1 (cash at index 0)
    daily_ret      : (B, M-1)
    p_val_prev, p_val_prev_eq : (B,)
    returns        : (B,) float32 loss per timestep.
    """
    action = jnp.asarray(action, jnp.float32)
    w_prev = jnp.asarray(w_prev, jnp.float32)
    daily_ret = jnp.asarray(daily_ret, jnp.float32)
    p_val_prev = jnp.asarray(p_val_prev, jnp.float32).reshape(-1)
    p_val_prev_eq = jnp.asarray(p_val_prev_eq, jnp.float32).reshape(-1)

    b, m = action.shape

    # Batch is the lane axis: pick a 128-lane-aligned block width, cap VMEM use,
    # and keep >= 2 grid steps when B is large enough (v7x has 2 TensorCores).
    n_groups = pl.cdiv(b, 128)
    groups_per_block = max(1, min(block_cols // 128, n_groups))
    if n_groups >= 2:
        groups_per_block = min(groups_per_block, pl.cdiv(n_groups, 2))
    tb = groups_per_block * 128
    num_blocks = pl.cdiv(n_groups, groups_per_block)
    b_pad = num_blocks * tb

    def pad_t(x, pad_value=0.0):
        # (B, K) -> (K, B_pad): batch onto lanes, zero-pad padded batch columns.
        return jnp.pad(x.T, ((0, 0), (0, b_pad - b)), constant_values=pad_value)

    a_t = pad_t(action)
    w_t = pad_t(w_prev)
    dr_t = pad_t(daily_ret)
    pvals = pad_t(jnp.stack([p_val_prev, p_val_prev_eq], axis=1), pad_value=1.0)

    kernel = functools.partial(
        _returns_loss_kernel,
        inv_m=1.0 / m,
        interest_rate=float(interest_rate),
        trading_cost=float(trading_cost),
        alpha=float(alpha))

    out = pl.pallas_call(
        kernel,
        out_shape=jax.ShapeDtypeStruct((1, b_pad), jnp.float32),
        grid=(num_blocks,),
        in_specs=[
            pl.BlockSpec((m, tb), lambda i: (0, i)),        # action^T
            pl.BlockSpec((m, tb), lambda i: (0, i)),        # w_prev^T
            pl.BlockSpec((m - 1, tb), lambda i: (0, i)),    # daily_ret^T
            pl.BlockSpec((2, tb), lambda i: (0, i)),        # [p_val_prev, p_val_prev_eq]
        ],
        out_specs=pl.BlockSpec((1, tb), lambda i: (0, i)),  # lane-dense stores
        compiler_params=pltpu.CompilerParams(dimension_semantics=("parallel",)),
    )(a_t, w_t, dr_t, pvals)
    # Padded batch lanes (b..b_pad) hold harmless finite garbage; slice them off.
    return out[0, :b]


def returns_loss_ref(action, w_prev, p_val_prev, daily_ret, p_val_prev_eq,
                     interest_rate=0.02 / 250, trading_cost=0.0025, alpha=0.1):
    """Pure-JAX single-step reference mirroring the PyTorch forward exactly."""
    m = action.shape[0]
    update_vec = jnp.concatenate(
        [jnp.array([1.0 + interest_rate], jnp.float32), daily_ret], axis=0)
    fee = p_val_prev * jnp.sum(jnp.abs(action - w_prev)) * trading_cost
    value_vec_prev = p_val_prev * action
    fee_vec = jnp.concatenate([jnp.reshape(fee, (1,)), jnp.zeros((m - 1,), jnp.float32)])
    value_vec_new = (value_vec_prev - fee_vec) * update_vec
    p_val_new = jnp.sum(value_vec_new)
    returns = (p_val_new - p_val_prev) / p_val_prev
    w_eq = jnp.ones((m,), jnp.float32) / m
    value_vec_new_eq = w_eq * p_val_prev_eq * update_vec
    p_val_new_eq = jnp.sum(jnp.abs(value_vec_new_eq))
    returns_eq = (p_val_new_eq - p_val_prev_eq) / p_val_prev_eq
    return -(returns - returns_eq - alpha * jnp.max(action))


def returns_loss(action, w_prev, p_val_prev, daily_ret, p_val_prev_eq, idx=None,
                 interest_rate=0.02 / 250, trading_cost=0.0025, alpha=0.1):
    """Single-step convenience wrapper matching the PyTorch forward signature.

    Per the perf review, B=1 skips Pallas entirely: launch/DMA overhead dwarfs
    the arithmetic on one 9-element row, and XLA fuses this into a single op.
    """
    del idx  # only used by the secondary objective (None by default)
    return returns_loss_ref(
        jnp.asarray(action, jnp.float32),
        jnp.asarray(w_prev, jnp.float32),
        jnp.asarray(p_val_prev, jnp.float32).reshape(()),
        jnp.asarray(daily_ret, jnp.float32),
        jnp.asarray(p_val_prev_eq, jnp.float32).reshape(()),
        interest_rate=interest_rate, trading_cost=trading_cost, alpha=alpha)


if __name__ == "__main__":
    key = jax.random.PRNGKey(0)
    k1, k2, k3, k4, k5 = jax.random.split(key, 5)

    num_stocks = 8
    m = num_stocks + 1      # cash + stocks
    batch = 16              # timesteps evaluated behind a single pallas_call

    action = jax.nn.softmax(jax.random.normal(k1, (batch, m), jnp.float32), axis=-1)
    w_prev = jax.nn.softmax(jax.random.normal(k2, (batch, m), jnp.float32), axis=-1)
    daily_ret = 1.0 + 0.01 * jax.random.normal(k3, (batch, num_stocks), jnp.float32)
    p_val_prev = 1000.0 * (1.0 + 0.1 * jax.random.uniform(k4, (batch,), jnp.float32))
    p_val_prev_eq = 1000.0 * (1.0 + 0.1 * jax.random.uniform(k5, (batch,), jnp.float32))

    # batched Pallas kernel
    loss = returns_loss_batched(action, w_prev, p_val_prev, daily_ret, p_val_prev_eq)
    loss = jax.block_until_ready(loss)
    assert loss.shape == (batch,), loss.shape

    ref = jax.vmap(returns_loss_ref)(action, w_prev, p_val_prev, daily_ret, p_val_prev_eq)
    assert jnp.allclose(loss, ref, rtol=1e-4, atol=1e-6), (loss, ref)

    # single-step interface (matches the PyTorch forward signature)
    one = returns_loss(action[0], w_prev[0], p_val_prev[0], daily_ret[0], p_val_prev_eq[0])
    one = jax.block_until_ready(one)
    assert jnp.allclose(one, ref[0], rtol=1e-4, atol=1e-6), (one, ref[0])

    print("KERNEL_OK")
</pallas_src>

<mosaic_0001>
module attributes {stable_mosaic.version = 11 : i64} {
  func.func @_returns_loss_kernel(%arg0: i32, %arg1: memref<9x128xf32, #tpu.memory_space<vmem>>, %arg2: memref<9x128xf32, #tpu.memory_space<vmem>>, %arg3: memref<8x128xf32, #tpu.memory_space<vmem>>, %arg4: memref<2x128xf32, #tpu.memory_space<vmem>>, %arg5: memref<1x128xf32, #tpu.memory_space<vmem>>) attributes {dimension_semantics = [#tpu.dimension_semantics<parallel>], iteration_bounds = array<i64: 1>, scalar_prefetch = 0 : i64, scratch_operands = 0 : i64, tpu.core_type = #tpu.core_type<tc>, window_params = [{transform_indices = @transform_0, window_bounds = array<i64: 9, 128>}, {transform_indices = @transform_1, window_bounds = array<i64: 9, 128>}, {transform_indices = @transform_2, window_bounds = array<i64: 8, 128>}, {transform_indices = @transform_3, window_bounds = array<i64: 2, 128>}, {transform_indices = @transform_4, window_bounds = array<i64: 1, 128>}]} {
    %c0 = arith.constant 0 : index
    %c0_0 = arith.constant 0 : index
    %0 = vector.load %arg1[%c0, %c0_0] : memref<9x128xf32, #tpu.memory_space<vmem>>, vector<9x128xf32>
    %c0_1 = arith.constant 0 : index
    %c0_2 = arith.constant 0 : index
    %1 = vector.load %arg2[%c0_1, %c0_2] : memref<9x128xf32, #tpu.memory_space<vmem>>, vector<9x128xf32>
    %c0_3 = arith.constant 0 : index
    %c0_4 = arith.constant 0 : index
    %2 = vector.load %arg3[%c0_3, %c0_4] : memref<8x128xf32, #tpu.memory_space<vmem>>, vector<8x128xf32>
    %c0_5 = arith.constant 0 : index
    %c0_6 = arith.constant 0 : index
    %3 = vector.load %arg4[%c0_5, %c0_6] : memref<2x128xf32, #tpu.memory_space<vmem>>, vector<1x128xf32>
    %c1 = arith.constant 1 : index
    %c0_7 = arith.constant 0 : index
    %4 = vector.load %arg4[%c1, %c0_7] : memref<2x128xf32, #tpu.memory_space<vmem>>, vector<1x128xf32>
    %5 = arith.subf %0, %1 : vector<9x128xf32>
    %6 = math.absf %5 : vector<9x128xf32>
    %cst = arith.constant dense<0.000000e+00> : vector<128xf32>
    %7 = vector.multi_reduction <add>, %6, %cst [0] : vector<9x128xf32> to vector<128xf32>
    %8 = vector.shape_cast %7 : vector<128xf32> to vector<1x128xf32>
    %9 = vector.extract_strided_slice %0 {offsets = [0, 0], sizes = [1, 128], strides = [1, 1]} : vector<9x128xf32> to vector<1x128xf32>
    %cst_8 = arith.constant 1.000080e+00 : f32
    %10 = vector.broadcast %cst_8 : f32 to vector<1x128xf32>
    %11 = arith.mulf %9, %10 : vector<1x128xf32>
    %12 = vector.extract_strided_slice %0 {offsets = [1, 0], sizes = [8, 128], strides = [1, 1]} : vector<9x128xf32> to vector<8x128xf32>
    %13 = arith.mulf %12, %2 : vector<8x128xf32>
    %cst_9 = arith.constant dense<0.000000e+00> : vector<128xf32>
    %14 = vector.multi_reduction <add>, %13, %cst_9 [0] : vector<8x128xf32> to vector<128xf32>
    %15 = vector.shape_cast %14 : vector<128xf32> to vector<1x128xf32>
    %16 = arith.addf %11, %15 : vector<1x128xf32>
    %17 = arith.mulf %3, %8 : vector<1x128xf32>
    %cst_10 = arith.constant 2.500000e-03 : f32
    %18 = vector.broadcast %cst_10 : f32 to vector<1x128xf32>
    %19 = arith.mulf %17, %18 : vector<1x128xf32>
    %20 = arith.mulf %3, %16 : vector<1x128xf32>
    %cst_11 = arith.constant 1.000080e+00 : f32
    %21 = vector.broadcast %cst_11 : f32 to vector<1x128xf32>
    %22 = arith.mulf %19, %21 : vector<1x128xf32>
    %23 = arith.subf %20, %22 : vector<1x128xf32>
    %24 = arith.subf %23, %3 : vector<1x128xf32>
    %25 = arith.divf %24, %3 : vector<1x128xf32>
    %26 = math.absf %2 : vector<8x128xf32>
    %cst_12 = arith.constant dense<0.000000e+00> : vector<128xf32>
    %27 = vector.multi_reduction <add>, %26, %cst_12 [0] : vector<8x128xf32> to vector<128xf32>
    %28 = vector.shape_cast %27 : vector<128xf32> to vector<1x128xf32>
    %cst_13 = arith.constant 1.000080e+00 : f32
    %29 = vector.broadcast %cst_13 : f32 to vector<1x128xf32>
    %30 = arith.addf %29, %28 : vector<1x128xf32>
    %31 = math.absf %4 : vector<1x128xf32>
    %cst_14 = arith.constant 0.111111112 : f32
    %32 = vector.broadcast %cst_14 : f32 to vector<1x128xf32>
    %33 = arith.mulf %31, %32 : vector<1x128xf32>
    %34 = arith.mulf %33, %30 : vector<1x128xf32>
    %35 = arith.subf %34, %4 : vector<1x128xf32>
    %36 = arith.divf %35, %4 : vector<1x128xf32>
    %cst_15 = arith.constant dense<0xFF800000> : vector<128xf32>
    %37 = vector.multi_reduction <maximumf>, %0, %cst_15 [0] : vector<9x128xf32> to vector<128xf32>
    %38 = vector.shape_cast %37 : vector<128xf32> to vector<1x128xf32>
    %39 = arith.subf %25, %36 : vector<1x128xf32>
    %cst_16 = arith.constant 1.000000e-01 : f32
    %40 = vector.broadcast %cst_16 : f32 to vector<1x128xf32>
    %41 = arith.mulf %40, %38 : vector<1x128xf32>
    %42 = arith.subf %39, %41 : vector<1x128xf32>
    %cst_17 = arith.constant 0.000000e+00 : f32
    %43 = vector.broadcast %cst_17 : f32 to vector<1x128xf32>
    %44 = arith.subf %43, %42 : vector<1x128xf32>
    %c0_18 = arith.constant 0 : index
    %c0_19 = arith.constant 0 : index
    %45 = vector.load %arg5[%c0_18, %c0_19] : memref<1x128xf32, #tpu.memory_space<vmem>>, vector<1x128xf32>
    tpu.vector_store %arg5[%c0_18, %c0_19], %44 {strides = array<i32>} : memref<1x128xf32, #tpu.memory_space<vmem>>, vector<1x128xf32>,
    return
  }
  func.func @transform_0(%arg0: i32) -> (i32, i32) {
    %c0_i32 = arith.constant 0 : i32
    %c0_i32_0 = arith.constant 0 : i32
    return %c0_i32, %arg0 : i32, i32
  }
  func.func @transform_1(%arg0: i32) -> (i32, i32) {
    %c0_i32 = arith.constant 0 : i32
    %c0_i32_0 = arith.constant 0 : i32
    return %c0_i32, %arg0 : i32, i32
  }
  func.func @transform_2(%arg0: i32) -> (i32, i32) {
    %c0_i32 = arith.constant 0 : i32
    %c0_i32_0 = arith.constant 0 : i32
    return %c0_i32, %arg0 : i32, i32
  }
  func.func @transform_3(%arg0: i32) -> (i32, i32) {
    %c0_i32 = arith.constant 0 : i32
    %c0_i32_0 = arith.constant 0 : i32
    return %c0_i32, %arg0 : i32, i32
  }
  func.func @transform_4(%arg0: i32) -> (i32, i32) {
    %c0_i32 = arith.constant 0 : i32
    %c0_i32_0 = arith.constant 0 : i32
    return %c0_i32, %arg0 : i32, i32
  }
}

</mosaic_0001>

<bundles_post_ra>
// kernel: tpu_custom_call.1
= control target key start
LH: loop header
LB: loop body
LE: loop exit
PB: predicated region body
PF: predicated region fallthrough
CT: control target
= control target key end

     0   :  { %9 = vsyncpa [#allocation3], 0  ;;  %s293_s0 = inlined_call_operand.hbm [shape: f32[9,128], index: 0, kind: input, shape index: {}]   ;;  %s294_s1 = inlined_call_operand.hbm [shape: f32[9,128], index: 1, kind: input, shape index: {}]   ;;  %s295_s2 = inlined_call_operand.hbm [shape: f32[8,128], index: 2, kind: input, shape index: {}]   ;;  %s296_s3 = inlined_call_operand.vmem [shape: f32[2,128], index: 3, kind: input, shape index: {}]   ;;  %s297_s4 = inlined_call_operand.hbm [shape: f32[1,128], index: 4, kind: output, shape index: {}]  }
   0x1   :  { %10 = vsyncpa [#allocation6], 0 }
   0x2   :  { %11 = vsyncpa [#allocation4], 0  ;;  %s244_s15 = smov [#allocation5]   ;;  %s245_s17 = smov [#allocation2]  }
   0x3   :  { %s29_s16 = sshll.u32 %s244_s15, 4  ;;  %s17_s18 = sshll.u32 %s245_s17, 4  ;;  %s30_s16 = int_to_ptr.vmem [resolvable:$true] %s29_s16  ;;  %s18_s18 = int_to_ptr.vmem [resolvable:$true] %s17_s18 }
   0x4   :  { %s166_s19 = scalar_lea.vmem %s30_s16, 256  ;;  %p171_p1 = scmp.lt.s32.totalorder %s30_s16, %s30_s16 }
   0x5   :  { %p167_p0 = scmp.ne.s32.totalorder %s30_s16, %s166_s19  ;;  %p172_p2 = scmp.lt.s32.totalorder %s166_s19, %s166_s19 }
   0x7   :  { %p173_p3 = por %p172_p2, %p171_p1 }
   0x9   :  { %p174_p4 = pnand %p173_p3, %p167_p0 }
   0xb   :  { %177 = shalt.err (!%p174_p4)
}
   0xc   :  { %s246_s20 = smov 128   ;;  %s247_s21 = smov 8  }
   0xd   :  { %35 = dma.hbm_to_vmem [thread:$0]  %s294_s1, 256, %s30_s16, [#allocation6], %s246_s20, %s246_s20, %s247_s21  }
   0xe   :  { %s186_s24 = scalar_lea.vmem %s18_s18, 256  ;;  %p191_p6 = scmp.lt.s32.totalorder %s18_s18, %s18_s18 }
   0xf   :  { %p187_p5 = scmp.ne.s32.totalorder %s18_s18, %s186_s24  ;;  %p192_p7 = scmp.lt.s32.totalorder %s186_s24, %s186_s24 }
  0x11   :  { %p193_p8 = por %p192_p7, %p191_p6 }
  0x13   :  { %p194_p9 = pnand %p193_p8, %p187_p5 }
  0x15   :  { %197 = shalt.err (!%p194_p9)
}
  0x16   :  { %23 = dma.hbm_to_vmem [thread:$0]  %s293_s0, 256, %s18_s18, [#allocation3], %s246_s20, %s246_s20, %s247_s21  }
  0x17   :  { %s248_s27 = smov [#allocation7]  }
  0x18   :  { %s42_s28 = sshll.u32 %s248_s27, 4  ;;  %s43_s28 = int_to_ptr.vmem [resolvable:$true] %s42_s28 }
  0x19   :  { %s206_s29 = scalar_lea.vmem %s43_s28, 128  ;;  %p211_p11 = scmp.lt.s32.totalorder %s43_s28, %s43_s28 }
  0x1a   :  { %p207_p10 = scmp.ne.s32.totalorder %s43_s28, %s206_s29  ;;  %p212_p12 = scmp.lt.s32.totalorder %s206_s29, %s206_s29 }
  0x1c   :  { %p213_p13 = por %p212_p12, %p211_p11 }
  0x1e   :  { %p214_p0 = pnand %p213_p13, %p207_p10 }
  0x20   :  { %217 = shalt.err (!%p214_p0)
}
  0x21   :  { %45 = dma.hbm_to_vmem [thread:$0]  %s295_s2, 128, %s43_s28, [#allocation6]  }
  0x22   :  { %238 = dma.done.wait [#allocation3], 256  }
  0x23   :  { %239 = vsyncadd [#allocation3], 4294967040 }
  0x24   :  { %240 = dma.done.wait [#allocation6], 384  }
  0x25   :  { %241 = vsyncadd [#allocation6], 4294966912  ;;  %v57_v0 = vld [vmem:[#allocation2] sm:$0xff]  ;;  %v58_v1 = vld [vmem:[#allocation2 + $0x8] sm:$0x1]  ;;  %vm68_vm0 = vcmask 1040384  }
  0x26   :  { %v59_v2 = vld [vmem:[#allocation5] sm:$0xff]  ;;  %v60_v3 = vld [vmem:[#allocation5 + $0x8] sm:$0x1]  ;;  %v61_v4 = vld [vmem:[#allocation7] sm:$0xff]  ;;  %v119_v6 = vsel %vm68_vm0, %v58_v1, -inf  ;;  %vm85_vm1 = vcmask 1046528  }
  0x27   :  { %v64_v5 = vsub.f32 %v57_v0, %v59_v2  ;;  %v65_v7 = vsub.f32 %v58_v1, %v60_v3  ;;  %v79_v8 = vrot.slane %v61_v4, 7  ;;  %v105_v10 = vand.u32 2147483647, %v61_v4  ;;  %v63_v26 = vld [vmem:[%s296_s3 + $0x1] sm:$0x1] }
  0x28   :  { %v120_v14 = vmax.f32 %v57_v0, %v119_v6  ;;  %v62_v27 = vld [vmem:[%s296_s3] sm:$0x1]  ;;  %v113_v32 = vand.u32 2147483647, %v63_v26  ;;  %154 = vrcp.f32 %v63_v26  ;;  %v77_v40 = vmul.f32 1.00008, %v57_v0 }
  0x29   :  { %v66_v9 = vand.u32 2147483647, %v64_v5  ;;  %v67_v11 = vand.u32 2147483647, %v65_v7  ;;  %v81_v12 = vmul.f32 %v79_v8, %v57_v0  ;;  %v82_v13 = vmul.f32 %v79_v8, %v58_v1  ;;  %s249_s3 = smov [#allocation8]  }
  0x2a   :  { %v106_v15 = vrot.slane %v105_v10, 4  ;;  %v121_v21 = vrot.slane %v120_v14, 4  ;;  %156 = vrcp.f32 %v62_v27  ;;  %v114_v44 = vmul.f32 0.11111111, %v113_v32  ;;  %s138_s7 = sshll.u32 %s249_s3, 4  ;;  %s139_s7 = int_to_ptr.vmem [resolvable:$true] %s138_s7 }
  0x2b   :  { %v69_v16 = vsel %vm68_vm0, %v67_v11, 0.0  ;;  %v86_v17 = vrot.slane %v81_v12, 1  ;;  %v87_v18 = vrot.slane %v82_v13, 1  ;;  %s218_s8 = scalar_lea.vmem %s139_s7, 16  ;;  %s222_s9 = scalar_lea.vmem %s139_s7, 32 }
  0x2c   :  { %v70_v19 = vadd.f32 %v69_v16, %v66_v9  ;;  %v107_v20 = vadd.f32 %v106_v15, %v105_v10  ;;  %v122_v31 = vmax.f32 %v120_v14, %v121_v21  ;;  %p219_p1 = scmp.ne.s32.totalorder %s139_s7, %s218_s8  ;;  %p223_p2 = scmp.lt.s32.totalorder %s139_s7, %s139_s7 }
  0x2d   :  { %v88_v22 = vsel %vm85_vm1, %v86_v17, %v87_v18  ;;  %p224_p3 = scmp.lt.s32.totalorder %s222_s9, %s218_s8 }
  0x2e   :  { %v71_v23 = vrot.slane %v70_v19, 4  ;;  %v90_v24 = vrot.slane %v88_v22, 4  ;;  %v108_v25 = vrot.slane %v107_v20, 2  ;;  %v123_v39 = vrot.slane %v122_v31, 2 }
  0x2f   :  { %p225_p4 = por %p224_p3, %p223_p2 }
  0x30   :  { %v72_v28 = vadd.f32 %v71_v23, %v70_v19  ;;  %v91_v29 = vadd.f32 %v90_v24, %v88_v22  ;;  %v109_v30 = vadd.f32 %v108_v25, %v107_v20  ;;  %v124_v47 = vmax.f32 %v122_v31, %v123_v39 }
  0x31   :  { %p226_p5 = pnand %p225_p4, %p219_p1 }
  0x32   :  { %v73_v33 = vrot.slane %v72_v28, 2  ;;  %v92_v34 = vrot.slane %v91_v29, 2  ;;  %v110_v35 = vrot.slane %v109_v30, 1  ;;  %v125_v53 = vrot.slane %v124_v47, 1 }
  0x34   :  { %v74_v36 = vadd.f32 %v73_v33, %v72_v28  ;;  %v93_v37 = vadd.f32 %v92_v34, %v91_v29  ;;  %v111_v38 = vadd.f32 %v110_v35, %v109_v30  ;;  %v126_v59 = vmax.f32 %v124_v47, %v125_v53 }
  0x35   :  { %v155_v56 = vpop.eup %154 }
  0x36   :  { %v75_v41 = vrot.slane %v74_v36, 1  ;;  %v94_v42 = vrot.slane %v93_v37, 1  ;;  %v112_v43 = vadd.f32 1.00008, %v111_v38  ;;  %v128_v63 = vmul.f32 0.1, %v126_v59 }
  0x37   :  { %v157_v57 = vpop.eup %156 }
  0x38   :  { %v76_v45 = vadd.f32 %v75_v41, %v74_v36  ;;  %v95_v46 = vadd.f32 %v94_v42, %v93_v37  ;;  %v115_v50 = vmul.f32 %v114_v44, %v112_v43 }
  0x3a   :  { %v96_v48 = vadd.f32 %v95_v46, %v77_v40  ;;  %v97_v49 = vmul.f32 %v76_v45, %v62_v27  ;;  %v116_v55 = vsub.f32 %v115_v50, %v63_v26 }
  0x3c   :  { %v98_v51 = vmul.f32 0.0025, %v97_v49  ;;  %v99_v52 = vmul.f32 %v96_v48, %v62_v27  ;;  %v118_v61 = vmul.f32 %v155_v56, %v116_v55 }
  0x3e   :  { %v100_v54 = vmul.f32 1.00008, %v98_v51 }
  0x40   :  { %v101_v58 = vsub.f32 %v99_v52, %v100_v54 }
  0x42   :  { %v102_v60 = vsub.f32 %v101_v58, %v62_v27 }
  0x44   :  { %v104_v62 = vmul.f32 %v157_v57, %v102_v60 }
  0x46   :  { %v127_v0 = vsub.f32 %v104_v62, %v118_v61 }
  0x48   :  { %v129_v1 = vsub.f32 %v127_v0, %v128_v63 }
  0x4a   :  { %v130_v2 = vsub.f32 0.0, %v129_v1 }
  0x4c   :  { %131 = vst [vmem:[#allocation8] sm:$0x1] %v130_v2 }
  0x4d   :  { %229 = shalt.err (!%p226_p5)
}
  0x4e   :  { %141 = dma.vmem_to_hbm [thread:$0]  %s139_s7, 16, %s297_s4, [#allocation4]  }
  0x4f   :  { %242 = dma.done.wait [#allocation4], 16  }
  0x50   :  { %243 = vsyncadd [#allocation4], 4294967280 }
  0x51   :  { %145 = vsyncpa [#allocation3], 1 }
  0x52   :  { %146 = vsyncpa [#allocation6], 1 }
  0x53   :  { %147 = vsyncpa [#allocation4], 1 }

</bundles_post_ra>
